<compile_context>
chip_gen: v7x
topology: tpu7x:2x2x1
jax: 0.10.0
libtpu: 0.0.40
codegen_flags: <defaults>
</compile_context>

<pallas_src>
import functools

import jax
import jax.numpy as jnp
from jax.experimental import pallas as pl
from jax.experimental.pallas import tpu as pltpu


def _round_up(x, m):
    return (x + m - 1) // m * m


def autoencoder_kernel(
    y_ref,      # (TN, L)
    w1_ref,     # (L, L//2)
    b1_ref,     # (1, L//2)
    w2_ref,     # (L//2, L//4)
    b2_ref,     # (1, L//4)
    w3_ref,     # (L//4, PP)  columns P..PP-1 are zero
    b3_ref,     # (1, PP)     lanes   P..PP-1 are -1e9 (kills softmax pad lanes)
    wd_ref,     # (P, LP)     columns L..LP-1 are zero
    code_ref,   # (TN, PP)    output 0 (lane-dense, padded)
    out_ref,    # (TN, LP)    output 1 (lane-dense, padded)
    *,
    p_dim: int,
):
    y = y_ref[...]

    # encoder layer 1: Linear(L, L//2) + Tanh   (MXU, f32 accumulate)
    h1 = jnp.tanh(
        jnp.dot(y, w1_ref[...], preferred_element_type=jnp.float32) + b1_ref[...]
    )

    # encoder layer 2: Linear(L//2, L//4) + Tanh
    h2 = jnp.tanh(
        jnp.dot(h1, w2_ref[...], preferred_element_type=jnp.float32) + b2_ref[...]
    )

    # encoder layer 3: Linear(L//4, P) + Softmax(dim=1), computed over PP lanes.
    # Pad lanes carry bias -1e9, so exp underflows to exactly 0 there.
    logits = jnp.dot(h2, w3_ref[...], preferred_element_type=jnp.float32) + b3_ref[...]
    m = jnp.max(logits, axis=-1, keepdims=True)
    e = jnp.exp(logits - m)
    s = jnp.sum(e, axis=-1, keepdims=True)
    r = pl.reciprocal(s, approx=True)     # EUP vrcp (separate VLIW slot)
    r = r * (2.0 - s * r)                 # one Newton step -> ~f32 accuracy
    code = e * r
    code_ref[...] = code.astype(code_ref.dtype)

    # decoder: Linear(P, L, bias=False).  K = P is tiny (<3% MXU fill), so do it
    # as P VPU broadcast-multiply-adds instead of a degenerate MXU matmul.
    wd = wd_ref[...]
    acc = code[:, 0:1] * wd[0:1, :]
    for p in range(1, p_dim):
        acc = acc + code[:, p:p + 1] * wd[p:p + 1, :]
    out_ref[...] = acc.astype(out_ref.dtype)


def autoencoder_forward(y, params, *, batch_tile=None):
    """y: (N, L) float32. params: dict of pre-transposed weights/biases.

    Returns (code (N, P), output (N, L)), matching the PyTorch module.
    """
    N, L = y.shape
    L2 = params["w1"].shape[1]
    L4 = params["w2"].shape[1]
    P = params["w3"].shape[1]

    PP = _round_up(P, 128)   # lane-dense code output
    LP = _round_up(L, 128)   # lane-dense decoder output

    # Batch tile: multiple of 8 sublanes, capped so VMEM stays bounded on v7x.
    TN = batch_tile if batch_tile is not None else min(_round_up(N, 8), 512)
    TN = _round_up(TN, 8)
    N_pad = _round_up(N, TN)

    y_p = y if N_pad == N else jnp.pad(y, ((0, N_pad - N), (0, 0)))

    w3p = params["w3"] if PP == P else jnp.pad(params["w3"], ((0, 0), (0, PP - P)))
    b3p = (
        params["b3"]
        if PP == P
        else jnp.pad(params["b3"], ((0, 0), (0, PP - P)), constant_values=-1e9)
    )
    wdp = params["wd"] if LP == L else jnp.pad(params["wd"], ((0, 0), (0, LP - L)))

    grid = (N_pad // TN,)
    resident = lambda i: (0, 0)  # weights: same block every step -> DMA'd once

    in_specs = [
        pl.BlockSpec((TN, L), lambda i: (i, 0)),   # y tile, pipelined over batch
        pl.BlockSpec((L, L2), resident),           # w1
        pl.BlockSpec((1, L2), resident),           # b1
        pl.BlockSpec((L2, L4), resident),          # w2
        pl.BlockSpec((1, L4), resident),           # b2
        pl.BlockSpec((L4, PP), resident),          # w3 (padded)
        pl.BlockSpec((1, PP), resident),           # b3 (padded)
        pl.BlockSpec((P, LP), resident),           # wd (padded)
    ]
    out_specs = (
        pl.BlockSpec((TN, PP), lambda i: (i, 0)),  # code (padded, lane-dense)
        pl.BlockSpec((TN, LP), lambda i: (i, 0)),  # output (padded, lane-dense)
    )

    # Explicit VMEM budget: double-buffered activation tiles + resident weights
    # + slack.  Floor 16 MiB, cap 48 MiB (< v7x's 64 MiB physical VMEM).
    step_bytes = 4 * TN * (L + PP + LP)
    weight_bytes = 4 * (L * L2 + L2 + L2 * L4 + L4 + L4 * PP + PP + P * LP)
    vmem_limit = int(
        min(48 * 2**20, max(16 * 2**20, 4 * step_bytes + 2 * weight_bytes + 4 * 2**20))
    )

    flops = 2 * N_pad * (L * L2 + L2 * L4 + L4 * PP + P * LP)
    transcendentals = N_pad * (L2 + L4 + PP + 1)
    bytes_accessed = 4 * N_pad * (L + PP + LP) + weight_bytes

    fn = pl.pallas_call(
        functools.partial(autoencoder_kernel, p_dim=P),
        grid=grid,
        in_specs=in_specs,
        out_specs=out_specs,
        out_shape=(
            jax.ShapeDtypeStruct((N_pad, PP), jnp.float32),  # code (padded)
            jax.ShapeDtypeStruct((N_pad, LP), jnp.float32),  # output (padded)
        ),
        compiler_params=pltpu.CompilerParams(
            dimension_semantics=("parallel",),   # batch tiles split across TCs (v7x)
            vmem_limit_bytes=vmem_limit,
        ),
        cost_estimate=pl.CostEstimate(
            flops=flops,
            transcendentals=transcendentals,
            bytes_accessed=bytes_accessed,
        ),
    )
    code_p, out_p = fn(
        y_p,
        params["w1"], params["b1"],
        params["w2"], params["b2"],
        w3p, b3p, wdp,
    )
    return code_p[:N, :P], out_p[:N, :L]


def init_params(key, L, P):
    """Deterministic synthetic parameters, stored as (in, out) matrices."""
    ks = jax.random.split(key, 7)
    scale = 0.1
    params = {
        "w1": scale * jax.random.normal(ks[0], (L, L // 2), jnp.float32),
        "b1": scale * jax.random.normal(ks[1], (1, L // 2), jnp.float32),
        "w2": scale * jax.random.normal(ks[2], (L // 2, L // 4), jnp.float32),
        "b2": scale * jax.random.normal(ks[3], (1, L // 4), jnp.float32),
        "w3": scale * jax.random.normal(ks[4], (L // 4, P), jnp.float32),
        "b3": scale * jax.random.normal(ks[5], (1, P), jnp.float32),
        "wd": scale * jax.random.normal(ks[6], (P, L), jnp.float32),
    }
    return params


def reference_forward(y, params):
    """Pure-JAX reference matching the PyTorch semantics."""
    h1 = jnp.tanh(y @ params["w1"] + params["b1"])
    h2 = jnp.tanh(h1 @ params["w2"] + params["b2"])
    code = jax.nn.softmax(h2 @ params["w3"] + params["b3"], axis=1)
    output = code @ params["wd"]
    return code, output


if __name__ == "__main__":
    L = 32      # input feature length
    P = 4       # number of endmembers / code size
    N = 8       # batch

    key = jax.random.PRNGKey(0)
    k_x, k_p = jax.random.split(key)
    y = jax.random.normal(k_x, (N, L), jnp.float32)
    params = init_params(k_p, L, P)

    code, output = autoencoder_forward(y, params)
    jax.block_until_ready((code, output))

    # correctness check against pure-JAX reference
    code_ref, output_ref = reference_forward(y, params)
    assert code.shape == (N, P) and output.shape == (N, L)
    assert jnp.allclose(code, code_ref, atol=1e-4, rtol=1e-4)
    assert jnp.allclose(output, output_ref, atol=1e-4, rtol=1e-4)

    print("KERNEL_OK")
</pallas_src>

<mosaic_0001>
module attributes {stable_mosaic.version = 11 : i64} {
  func.func @autoencoder_kernel(%arg0: i32, %arg1: memref<8x32xf32, #tpu.memory_space<vmem>>, %arg2: memref<32x16xf32, #tpu.memory_space<vmem>>, %arg3: memref<1x16xf32, #tpu.memory_space<vmem>>, %arg4: memref<16x8xf32, #tpu.memory_space<vmem>>, %arg5: memref<1x8xf32, #tpu.memory_space<vmem>>, %arg6: memref<8x128xf32, #tpu.memory_space<vmem>>, %arg7: memref<1x128xf32, #tpu.memory_space<vmem>>, %arg8: memref<4x128xf32, #tpu.memory_space<vmem>>, %arg9: memref<8x128xf32, #tpu.memory_space<vmem>>, %arg10: memref<8x128xf32, #tpu.memory_space<vmem>>) attributes {dimension_semantics = [#tpu.dimension_semantics<parallel>], iteration_bounds = array<i64: 1>, scalar_prefetch = 0 : i64, scratch_operands = 0 : i64, tpu.core_type = #tpu.core_type<tc>, window_params = [{transform_indices = @transform_0, window_bounds = array<i64: 8, 32>}, {pipeline_mode = #tpu.pipeline_mode<synchronous>, transform_indices = @transform_1, window_bounds = array<i64: 32, 16>}, {pipeline_mode = #tpu.pipeline_mode<synchronous>, transform_indices = @transform_2, window_bounds = array<i64: 1, 16>}, {pipeline_mode = #tpu.pipeline_mode<synchronous>, transform_indices = @transform_3, window_bounds = array<i64: 16, 8>}, {pipeline_mode = #tpu.pipeline_mode<synchronous>, transform_indices = @transform_4, window_bounds = array<i64: 1, 8>}, {pipeline_mode = #tpu.pipeline_mode<synchronous>, transform_indices = @transform_5, window_bounds = array<i64: 8, 128>}, {pipeline_mode = #tpu.pipeline_mode<synchronous>, transform_indices = @transform_6, window_bounds = array<i64: 1, 128>}, {pipeline_mode = #tpu.pipeline_mode<synchronous>, transform_indices = @transform_7, window_bounds = array<i64: 4, 128>}, {transform_indices = @transform_8, window_bounds = array<i64: 8, 128>}, {transform_indices = @transform_9, window_bounds = array<i64: 8, 128>}]} {
    %c0 = arith.constant 0 : index
    %c0_0 = arith.constant 0 : index
    %0 = vector.load %arg1[%c0, %c0_0] : memref<8x32xf32, #tpu.memory_space<vmem>>, vector<8x32xf32>
    %c0_1 = arith.constant 0 : index
    %c0_2 = arith.constant 0 : index
    %1 = vector.load %arg2[%c0_1, %c0_2] : memref<32x16xf32, #tpu.memory_space<vmem>>, vector<32x16xf32>
    %cst = arith.constant dense<0.000000e+00> : vector<8x16xf32>
    %2 = tpu.matmul %0, %1, %cst {dimension_numbers = #tpu.dot_dimension_numbers<[1], [0], [0], [1], [0, 0, 1, 1], [], []>} : vector<8x32xf32>, vector<32x16xf32>, vector<8x16xf32> -> vector<8x16xf32>
    %c0_3 = arith.constant 0 : index
    %c0_4 = arith.constant 0 : index
    %3 = vector.load %arg3[%c0_3, %c0_4] : memref<1x16xf32, #tpu.memory_space<vmem>>, vector<1x16xf32>
    %4 = vector.broadcast %3 : vector<1x16xf32> to vector<8x16xf32>
    %5 = arith.addf %2, %4 : vector<8x16xf32>
    %6 = math.tanh %5 : vector<8x16xf32>
    %c0_5 = arith.constant 0 : index
    %c0_6 = arith.constant 0 : index
    %7 = vector.load %arg4[%c0_5, %c0_6] : memref<16x8xf32, #tpu.memory_space<vmem>>, vector<16x8xf32>
    %cst_7 = arith.constant dense<0.000000e+00> : vector<8x8xf32>
    %8 = tpu.matmul %6, %7, %cst_7 {dimension_numbers = #tpu.dot_dimension_numbers<[1], [0], [0], [1], [0, 0, 1, 1], [], []>} : vector<8x16xf32>, vector<16x8xf32>, vector<8x8xf32> -> vector<8x8xf32>
    %c0_8 = arith.constant 0 : index
    %c0_9 = arith.constant 0 : index
    %9 = vector.load %arg5[%c0_8, %c0_9] : memref<1x8xf32, #tpu.memory_space<vmem>>, vector<1x8xf32>
    %10 = vector.broadcast %9 : vector<1x8xf32> to vector<8x8xf32>
    %11 = arith.addf %8, %10 : vector<8x8xf32>
    %12 = math.tanh %11 : vector<8x8xf32>
    %c0_10 = arith.constant 0 : index
    %c0_11 = arith.constant 0 : index
    %13 = vector.load %arg6[%c0_10, %c0_11] : memref<8x128xf32, #tpu.memory_space<vmem>>, vector<8x128xf32>
    %cst_12 = arith.constant dense<0.000000e+00> : vector<8x128xf32>
    %14 = tpu.matmul %12, %13, %cst_12 {dimension_numbers = #tpu.dot_dimension_numbers<[1], [0], [0], [1], [0, 0, 1, 1], [], []>} : vector<8x8xf32>, vector<8x128xf32>, vector<8x128xf32> -> vector<8x128xf32>
    %c0_13 = arith.constant 0 : index
    %c0_14 = arith.constant 0 : index
    %15 = vector.load %arg7[%c0_13, %c0_14] : memref<1x128xf32, #tpu.memory_space<vmem>>, vector<1x128xf32>
    %16 = vector.broadcast %15 : vector<1x128xf32> to vector<8x128xf32>
    %17 = arith.addf %14, %16 : vector<8x128xf32>
    %cst_15 = arith.constant dense<0xFF800000> : vector<8xf32>
    %18 = vector.multi_reduction <maximumf>, %17, %cst_15 [1] : vector<8x128xf32> to vector<8xf32>
    %19 = vector.shape_cast %18 : vector<8xf32> to vector<8x1xf32>
    %20 = vector.broadcast %19 : vector<8x1xf32> to vector<8x128xf32>
    %21 = arith.subf %17, %20 : vector<8x128xf32>
    %22 = math.exp %21 : vector<8x128xf32>
    %cst_16 = arith.constant dense<0.000000e+00> : vector<8xf32>
    %23 = vector.multi_reduction <add>, %22, %cst_16 [1] : vector<8x128xf32> to vector<8xf32>
    %24 = vector.shape_cast %23 : vector<8xf32> to vector<8x1xf32>
    %25 = tpu.reciprocal %24 {approx = true} : vector<8x1xf32> -> vector<8x1xf32>
    %26 = arith.mulf %24, %25 : vector<8x1xf32>
    %cst_17 = arith.constant 2.000000e+00 : f32
    %27 = vector.broadcast %cst_17 : f32 to vector<8x1xf32>
    %28 = arith.subf %27, %26 : vector<8x1xf32>
    %29 = arith.mulf %25, %28 : vector<8x1xf32>
    %30 = vector.broadcast %29 : vector<8x1xf32> to vector<8x128xf32>
    %31 = arith.mulf %22, %30 : vector<8x128xf32>
    %c0_18 = arith.constant 0 : index
    %c0_19 = arith.constant 0 : index
    %32 = vector.load %arg9[%c0_18, %c0_19] : memref<8x128xf32, #tpu.memory_space<vmem>>, vector<8x128xf32>
    tpu.vector_store %arg9[%c0_18, %c0_19], %31 {strides = array<i32>} : memref<8x128xf32, #tpu.memory_space<vmem>>, vector<8x128xf32>,
    %c0_20 = arith.constant 0 : index
    %c0_21 = arith.constant 0 : index
    %33 = vector.load %arg8[%c0_20, %c0_21] : memref<4x128xf32, #tpu.memory_space<vmem>>, vector<4x128xf32>
    %34 = vector.extract_strided_slice %31 {offsets = [0, 0], sizes = [8, 1], strides = [1, 1]} : vector<8x128xf32> to vector<8x1xf32>
    %35 = vector.extract_strided_slice %33 {offsets = [0, 0], sizes = [1, 128], strides = [1, 1]} : vector<4x128xf32> to vector<1x128xf32>
    %36 = vector.broadcast %34 : vector<8x1xf32> to vector<8x128xf32>
    %37 = vector.broadcast %35 : vector<1x128xf32> to vector<8x128xf32>
    %38 = arith.mulf %36, %37 : vector<8x128xf32>
    %39 = vector.extract_strided_slice %31 {offsets = [0, 1], sizes = [8, 1], strides = [1, 1]} : vector<8x128xf32> to vector<8x1xf32>
    %40 = vector.extract_strided_slice %33 {offsets = [1, 0], sizes = [1, 128], strides = [1, 1]} : vector<4x128xf32> to vector<1x128xf32>
    %41 = vector.broadcast %39 : vector<8x1xf32> to vector<8x128xf32>
    %42 = vector.broadcast %40 : vector<1x128xf32> to vector<8x128xf32>
    %43 = arith.mulf %41, %42 : vector<8x128xf32>
    %44 = arith.addf %38, %43 : vector<8x128xf32>
    %45 = vector.extract_strided_slice %31 {offsets = [0, 2], sizes = [8, 1], strides = [1, 1]} : vector<8x128xf32> to vector<8x1xf32>
    %46 = vector.extract_strided_slice %33 {offsets = [2, 0], sizes = [1, 128], strides = [1, 1]} : vector<4x128xf32> to vector<1x128xf32>
    %47 = vector.broadcast %45 : vector<8x1xf32> to vector<8x128xf32>
    %48 = vector.broadcast %46 : vector<1x128xf32> to vector<8x128xf32>
    %49 = arith.mulf %47, %48 : vector<8x128xf32>
    %50 = arith.addf %44, %49 : vector<8x128xf32>
    %51 = vector.extract_strided_slice %31 {offsets = [0, 3], sizes = [8, 1], strides = [1, 1]} : vector<8x128xf32> to vector<8x1xf32>
    %52 = vector.extract_strided_slice %33 {offsets = [3, 0], sizes = [1, 128], strides = [1, 1]} : vector<4x128xf32> to vector<1x128xf32>
    %53 = vector.broadcast %51 : vector<8x1xf32> to vector<8x128xf32>
    %54 = vector.broadcast %52 : vector<1x128xf32> to vector<8x128xf32>
    %55 = arith.mulf %53, %54 : vector<8x128xf32>
    %56 = arith.addf %50, %55 : vector<8x128xf32>
    %c0_22 = arith.constant 0 : index
    %c0_23 = arith.constant 0 : index
    %57 = vector.load %arg10[%c0_22, %c0_23] : memref<8x128xf32, #tpu.memory_space<vmem>>, vector<8x128xf32>
    tpu.vector_store %arg10[%c0_22, %c0_23], %56 {strides = array<i32>} : memref<8x128xf32, #tpu.memory_space<vmem>>, vector<8x128xf32>,
    return
  }
  func.func @transform_0(%arg0: i32) -> (i32, i32) {
    %c0_i32 = arith.constant 0 : i32
    %c0_i32_0 = arith.constant 0 : i32
    return %arg0, %c0_i32 : i32, i32
  }
  func.func @transform_1(%arg0: i32) -> (i32, i32) {
    %c0_i32 = arith.constant 0 : i32
    %c0_i32_0 = arith.constant 0 : i32
    %c0_i32_1 = arith.constant 0 : i32
    return %c0_i32, %c0_i32_0 : i32, i32
  }
  func.func @transform_2(%arg0: i32) -> (i32, i32) {
    %c0_i32 = arith.constant 0 : i32
    %c0_i32_0 = arith.constant 0 : i32
    %c0_i32_1 = arith.constant 0 : i32
    return %c0_i32, %c0_i32_0 : i32, i32
  }
  func.func @transform_3(%arg0: i32) -> (i32, i32) {
    %c0_i32 = arith.constant 0 : i32
    %c0_i32_0 = arith.constant 0 : i32
    %c0_i32_1 = arith.constant 0 : i32
    return %c0_i32, %c0_i32_0 : i32, i32
  }
  func.func @transform_4(%arg0: i32) -> (i32, i32) {
    %c0_i32 = arith.constant 0 : i32
    %c0_i32_0 = arith.constant 0 : i32
    %c0_i32_1 = arith.constant 0 : i32
    return %c0_i32, %c0_i32_0 : i32, i32
  }
  func.func @transform_5(%arg0: i32) -> (i32, i32) {
    %c0_i32 = arith.constant 0 : i32
    %c0_i32_0 = arith.constant 0 : i32
    %c0_i32_1 = arith.constant 0 : i32
    return %c0_i32, %c0_i32_0 : i32, i32
  }
  func.func @transform_6(%arg0: i32) -> (i32, i32) {
    %c0_i32 = arith.constant 0 : i32
    %c0_i32_0 = arith.constant 0 : i32
    %c0_i32_1 = arith.constant 0 : i32
    return %c0_i32, %c0_i32_0 : i32, i32
  }
  func.func @transform_7(%arg0: i32) -> (i32, i32) {
    %c0_i32 = arith.constant 0 : i32
    %c0_i32_0 = arith.constant 0 : i32
    %c0_i32_1 = arith.constant 0 : i32
    return %c0_i32, %c0_i32_0 : i32, i32
  }
  func.func @transform_8(%arg0: i32) -> (i32, i32) {
    %c0_i32 = arith.constant 0 : i32
    %c0_i32_0 = arith.constant 0 : i32
    return %arg0, %c0_i32 : i32, i32
  }
  func.func @transform_9(%arg0: i32) -> (i32, i32) {
    %c0_i32 = arith.constant 0 : i32
    %c0_i32_0 = arith.constant 0 : i32
    return %arg0, %c0_i32 : i32, i32
  }
}

</mosaic_0001>

<bundles_post_ra>
// kernel: tpu_custom_call.1
= control target key start
LH: loop header
LB: loop body
LE: loop exit
PB: predicated region body
PF: predicated region fallthrough
CT: control target
= control target key end

     0   :  { %15 = vsyncpa [#allocation3], 0  ;;  %v487_v3 = vmov 0.0|0.0   ;;  %vm488_vm0 = vmmov 0   ;;  %v489_v6 = vmov 0.0   ;;  %s609_s0 = inlined_call_operand.vmem [shape: f32[8,32], index: 0, kind: input, shape index: {}]   ;;  %s610_s1 = inlined_call_operand.vmem [shape: f32[32,16], index: 1, kind: input, shape index: {}]   ;;  %s611_s2 = inlined_call_operand.vmem [shape: f32[1,16], index: 2, kind: input, shape index: {}]   ;;  %s612_s3 = inlined_call_operand.vmem [shape: f32[16,8], index: 3, kind: input, shape index: {}]   ;;  %s613_s4 = inlined_call_operand.vmem [shape: f32[1,8], index: 4, kind: input, shape index: {}]   ;;  %s614_s5 = inlined_call_operand.vmem [shape: f32[8,128], index: 5, kind: input, shape index: {}]   ;;  %s615_s6 = inlined_call_operand.vmem [shape: f32[1,128], index: 6, kind: input, shape index: {}]   ;;  %s616_s7 = inlined_call_operand.vmem [shape: f32[4,128], index: 7, kind: input, shape index: {}]   ;;  %s617_s8 = inlined_call_operand.hbm [shape: f32[8,128], index: 8, kind: output, shape index: {0}]   ;;  %s618_s9 = inlined_call_operand.hbm [shape: f32[8,128], index: 9, kind: output, shape index: {1}]  }
   0x1   :  { %v34_v0 = vld [vmem:[%s610_s1] sm:$0xff]  ;;  %v35_v1 = vld [vmem:[%s610_s1 + $0x8] sm:$0xff]  ;;  %v36_v2 = vld [vmem:[%s610_s1 + $0x10] sm:$0xff]  ;;  %408 = vmatprep.subr.bf16.mxu0 %v487_v3  ;;  %393 = vmatprep.mubr.msk.f32.mxu0 %vm488_vm0, %v489_v6 }
   0x2   :  { %v409_v4 = vpack.c.bf16 %v35_v1, %v34_v0  ;;  %v37_v5 = vld [vmem:[%s610_s1 + $0x18] sm:$0xff]  ;;  %414 = vmatprep.subr.bf16.mxu1 %v487_v3  ;;  %400 = vmatprep.mubr.msk.f32.mxu1 %vm488_vm0, %v489_v6 }
   0x3   :  { %16 = vsyncpa [#allocation5], 0  ;;  %v412_v7 = vpack.c.bf16 %v37_v5, %v36_v2  ;;  %v33_v8 = vld [vmem:[%s609_s0] sm:$0xff]  ;;  %vm45_vm1 = vcmask 261120   ;;  %v121_v10 = vld [vmem:[%s612_s3 + $0x8] sm:$0xff]  ;;  %vm129_vm2 = vcmask 130048  }
   0x4   :  { %410 = vmatpush3.bf16.msra.mxu0 %v409_v4  ;;  %v120_v9 = vld [vmem:[%s612_s3] sm:$0xff]  ;;  %vm212_vm3 = vcmask 64512   ;;  %v490_v31 = vmov 2   ;;  %v491_v32 = vmov 0   ;;  %v492_v39 = vmov 1  }
   0x5   :  { %411 = vmatprep.subr.bf16.mxu0 %v487_v3  ;;  %v415_v11 = vpack.c.bf16 %v121_v10, %v120_v9  ;;  %v369_v12 = vld [vmem:[%s611_s2] ss:$0 sm:$0xff]  ;;  %428 = vset.pattern.permute.xlu0 %v490_v31  ;;  %v493_v40 = vmov 3  }
   0x6   :  { %v204_v17 = vld [vmem:[%s614_s5] sm:$0xff]  ;;  %426 = vset.pattern.permute.xlu1 %v491_v32 }
   0x7   :  { %416 = vmatpush3.bf16.msra.mxu1 %v415_v11  ;;  %v371_v18 = vld [vmem:[%s613_s4] ss:$0 sm:$0xff]  ;;  %s494_s4 = smov [#allocation2]  }
   0x8   :  { %413 = vmatpush3.bf16.msra.mxu0 %v412_v7  ;;  %403 = vmatprep.subr.mxu1 %v489_v6  ;;  %v373_v23 = vld [vmem:[%s615_s6] ss:$0 sm:$0xff]  ;;  %s347_s5 = sshll.u32 %s494_s4, 4  ;;  %s348_s5 = int_to_ptr.vmem [resolvable:$true] %s347_s5 }
   0x9   :  { %s439_s6 = scalar_lea.vmem %s348_s5, 128  ;;  %p444_p1 = scmp.lt.s32.totalorder %s348_s5, %s348_s5 }
   0xa   :  { %p440_p0 = scmp.ne.s32.totalorder %s348_s5, %s439_s6  ;;  %p445_p2 = scmp.lt.s32.totalorder %s439_s6, %s439_s6 }
   0xb   :  { %394 = vmatmul.mubr.msk.f32.vlgmr.msra.gmra.mrb[0].mxu0 %vm45_vm1, %v33_v8 }
   0xc   :  { %p446_p3 = por %p445_p2, %p444_p1 }
   0xe   :  { %p447_p4 = pnand %p446_p3, %p440_p0 }
  0xde   :  { %v115_v13 = vpop.f32.mrb[0].mxu0 }
  0xdf   :  { %v116_v14 = vadd.f32 %v369_v12, %v115_v13  ;;  %v395_v15 = vpop.f32.mrb[1].mxu0 }
  0xe1   :  { %431 = vtanh.f32 %v116_v14 }
  0xeb   :  { %v432_v16 = vpop.eup %431 }
  0xec   :  { %401 = vmatmul.mubr.msk.f32.vlgmr.msra.gmra.mrb[0].mxu1 %vm129_vm2, %v432_v16 }
  0xed   :  { %405 = vmatprep.mubr.msk.f32.mxu1 %vm488_vm0, %v489_v6  ;;  %404 = vmatpush3.msra.mxu1 %v204_v17 }
 0x1bf   :  { %v199_v19 = vpop.f32.mrb[0].mxu1 }
 0x1c0   :  { %v200_v20 = vadd.f32 %v371_v18, %v199_v19  ;;  %v402_v21 = vpop.f32.mrb[1].mxu1 }
 0x1c2   :  { %433 = vtanh.f32 %v200_v20 }
 0x1cc   :  { %v434_v22 = vpop.eup %433 }
 0x1cd   :  { %406 = vmatmul.mubr.msk.f32.vlgmr.msra.gmra.mrb[2].mxu1 %vm212_vm3, %v434_v22 }
 0x2a0   :  { %v282_v24 = vpop.f32.mrb[2].mxu1 }
 0x2a1   :  { %v283_v25 = vadd.f32 %v373_v23, %v282_v24  ;;  %v407_v26 = vpop.f32.mrb[3].mxu1 }
 0x2a3   :  { %286 = vmax.xlane.f32.xlu0 %v283_v25 }
 0x330   :  { %v287_v27 = vpop.xlane.xlu0 %286 }
 0x331   :  { %v288_v28 = vsub.f32 %v283_v25, %v287_v27 }
 0x333   :  { %v289_v29 = vmul.f32 1.442695, %v288_v28 }
 0x335   :  { %435 = vpow2.f32 %v289_v29 }
 0x33f   :  { %v436_v30 = vpop.eup %435 }
 0x340   :  { %291 = vadd.xlane.f32.xlu0 %v436_v30 }
 0x3cd   :  { %v292_v33 = vpop.xlane.xlu0 %291 }
 0x3ce   :  { %437 = vrcp.f32 %v292_v33 }
 0x3d8   :  { %v438_v34 = vpop.eup %437 }
 0x3d9   :  { %v294_v35 = vmul.f32 %v438_v34, %v292_v33 }
 0x3db   :  { %v295_v36 = vsub.f32 2.0, %v294_v35 }
 0x3dd   :  { %v296_v37 = vmul.f32 %v438_v34, %v295_v36 }
 0x3df   :  { %v297_v38 = vmul.f32 %v436_v30, %v296_v37 }
 0x3e1   :  { %298 = vst [vmem:[#allocation2] sm:$0xff] %v297_v38  ;;  %321 = vperm.xlu0 %428, %v297_v38   ;;  %302 = vperm.xlu1 %426, %v297_v38  }
 0x3e5   :  { %427 = vset.pattern.permute.xlu1 %v492_v39  ;;  %430 = vset.pattern.permute.xlu0 %v493_v40 }
 0x3e6   :  { %311 = vperm.xlu1 %427, %v297_v38  }
 0x3ea   :  { %429 = vset.pattern.permute.xlu1 %v493_v40 }
 0x3eb   :  { %331 = vperm.xlu1 %429, %v297_v38  }
 0x3ec   :  { %450 = shalt.err (!%p447_p4)
}
 0x3ed   :  { %s451_s29 = scalar_lea.hbm %s617_s8, 128 }
 0x3ee   :  { %p452_p5 = scmp.ne.s32.totalorder %s617_s8, %s451_s29  ;;  %p455_p6 = scmp.lt.u32.totalorder %s451_s29, %s617_s8 }
 0x3f0   :  { %p457_p7 = pnand %p455_p6, %p452_p5 }
 0x3f2   :  { %460 = shalt.err (!%p457_p7)
}
 0x3f3   :  { %350 = dma.vmem_to_hbm [thread:$0]  %s348_s5, 128, %s617_s8, [#allocation3]   ;;  %v305_v41 = vlaneseq  ;;  %v299_v45 = vld [vmem:[%s616_s7] sm:$0xf] }
 0x3f4   :  { %s495_s8 = smov [#allocation4]  }
 0x3f5   :  { %v306_v42 = vshrl.u32 %v305_v41, 7  ;;  %s357_s17 = sshll.u32 %s495_s8, 4  ;;  %s358_s17 = int_to_ptr.vmem [resolvable:$true] %s357_s17 }
 0x3f6   :  { %s461_s7 = scalar_lea.vmem %s358_s17, 128  ;;  %p466_p9 = scmp.lt.s32.totalorder %s358_s17, %s358_s17 }
 0x3f7   :  { %v307_v43 = vsub.s32 0, %v306_v42  ;;  %v316_v44 = vsub.s32 1, %v306_v42  ;;  %v326_v46 = vsub.s32 2, %v306_v42  ;;  %v336_v50 = vsub.s32 3, %v306_v42  ;;  %p462_p8 = scmp.ne.s32.totalorder %s358_s17, %s461_s7  ;;  %p467_p10 = scmp.lt.s32.totalorder %s461_s7, %s461_s7 }
 0x3f9   :  { %v308_v48 = vrot.slane %v299_v45, %v307_v43  ;;  %v317_v49 = vrot.slane %v299_v45, %v316_v44  ;;  %v327_v51 = vrot.slane %v299_v45, %v326_v46  ;;  %v337_v56 = vrot.slane %v299_v45, %v336_v50  ;;  %p468_p11 = por %p467_p10, %p466_p9 }
 0x3fb   :  { %p469_p12 = pnand %p468_p11, %p462_p8 }
 0x460   :  { %v303_v47 = vpop.permute.xlu1 %302  ;;  %v322_v52 = vpop.permute.xlu0 %321 }
 0x461   :  { %v309_v54 = vmul.f32 %v308_v48, %v303_v47  ;;  %v328_v57 = vmul.f32 %v327_v51, %v322_v52 }
 0x465   :  { %v312_v53 = vpop.permute.xlu1 %311 }
 0x466   :  { %v318_v55 = vmul.f32 %v317_v49, %v312_v53 }
 0x468   :  { %v319_v58 = vadd.f32 %v318_v55, %v309_v54 }
 0x46a   :  { %v332_v59 = vpop.permute.xlu1 %331  ;;  %v329_v60 = vadd.f32 %v328_v57, %v319_v58 }
 0x46b   :  { %v338_v61 = vmul.f32 %v337_v56, %v332_v59 }
 0x46d   :  { %v339_v62 = vadd.f32 %v338_v61, %v329_v60 }
 0x46f   :  { %340 = vst [vmem:[#allocation4] sm:$0xff] %v339_v62 }
 0x470   :  { %472 = shalt.err (!%p469_p12)
}
 0x471   :  { %s473_s1 = scalar_lea.hbm %s618_s9, 128 }
 0x472   :  { %p474_p13 = scmp.ne.s32.totalorder %s618_s9, %s473_s1  ;;  %p477_p0 = scmp.lt.u32.totalorder %s473_s1, %s618_s9 }
 0x474   :  { %p479_p1 = pnand %p477_p0, %p474_p13 }
 0x476   :  { %482 = shalt.err (!%p479_p1)
}
 0x477   :  { %360 = dma.vmem_to_hbm [thread:$0]  %s358_s17, 128, %s618_s9, [#allocation5]  }
 0x478   :  { %483 = dma.done.wait [#allocation3], 128  }
 0x479   :  { %484 = vsyncadd [#allocation3], 4294967168 }
 0x47a   :  { %485 = dma.done.wait [#allocation5], 128  }
 0x47b   :  { %486 = vsyncadd [#allocation5], 4294967168 }
 0x47c   :  { %367 = vsyncpa [#allocation3], 1 }
 0x47d   :  { %368 = vsyncpa [#allocation5], 1 }

</bundles_post_ra>
